<compile_context>
chip_gen: v6e
topology: v6e:2x2x1
jax: 0.10.0
libtpu: 0.0.40
codegen_flags: <defaults>
</compile_context>

<pallas_src>
import functools
import math

import jax
import jax.numpy as jnp
from jax.experimental import pallas as pl
from jax.experimental.pallas import tpu as pltpu


# Row indices inside the packed (10, max(D,FF)) f32 vector slab.
_BQ, _BK, _BV, _BO, _B1, _B2, _G2, _BE2, _G3, _BE3 = range(10)


# ----------------------------------------------------------------------------
# Pallas kernel: full decoder-layer forward, whole batch in one grid step.
# Token rows are ordered (seq, batch) with batch minor: row = l*N + n.
# ----------------------------------------------------------------------------
def _decoder_layer_kernel(*refs, nhead, batch, has_qpos, has_pos, eps=1e-5):
    it = iter(refs)
    tgt_ref = next(it)                       # (L*N, D) f32
    mem_ref = next(it)                       # (S*N, D) f32
    qpos_ref = next(it) if has_qpos else None
    pos_ref = next(it) if has_pos else None
    pad_ref = next(it)                       # (1, S*N) f32 additive: 0 keep / -1e30 drop
    w_in_ref = next(it)                      # (D, 4D+FF) bf16: [wq*scale | wk | wv | wo | w1]
    w2_ref = next(it)                        # (FF, D) bf16
    vec_ref = next(it)                       # (10, max(D,FF)) f32 biases / norm params
    out_ref = next(it)                       # (L*N, D) f32

    f32, bf16 = jnp.float32, jnp.bfloat16

    tgt = tgt_ref[...]
    mem = mem_ref[...]
    LN, D = tgt.shape
    SN = mem.shape[0]
    hd = D // nhead
    FF = w2_ref.shape[0]
    OQ, OK, OV, OO, OF1 = 0, D, 2 * D, 3 * D, 4 * D
    NEG = f32(-1e30)

    def vrow(r, lo, width):                  # static ref slice of the vector slab
        return vec_ref[r:r + 1, lo:lo + width]

    # with_pos_embed (trace-time optional; Adapter passes None)
    q_in = tgt if qpos_ref is None else tgt + qpos_ref[...]
    k_in = mem if pos_ref is None else mem + pos_ref[...]

    q_in_b = q_in.astype(bf16)
    k_in_b = k_in.astype(bf16)
    v_in_b = mem.astype(bf16)                # value path uses memory without pos

    # Cross-batch + key-padding additive mask, hoisted out of the head loop.
    # Rows/cols are (seq, batch) with batch minor -> batch id = index % batch.
    q_bid = jax.lax.broadcasted_iota(jnp.int32, (LN, SN), 0) % batch
    k_bid = jax.lax.broadcasted_iota(jnp.int32, (LN, SN), 1) % batch
    neg_mask = jnp.where(q_bid == k_bid, pad_ref[...], NEG)       # (LN, SN) f32

    # Multi-head attention: per-head weights are static ref slices of the slab
    # (softmax scale already folded into wq / bq at parameter prep).
    attn = jnp.zeros((LN, D), f32)
    for h in range(nhead):                   # nhead = 2: short static loop
        lo = h * hd
        wq_h = w_in_ref[:, OQ + lo:OQ + lo + hd]                  # (D, hd) bf16
        wk_h = w_in_ref[:, OK + lo:OK + lo + hd]
        wv_h = w_in_ref[:, OV + lo:OV + lo + hd]
        wo_h = w_in_ref[lo:lo + hd, OO:OO + D]                    # (hd, D) bf16

        qh = jnp.dot(q_in_b, wq_h, preferred_element_type=f32) + vrow(_BQ, lo, hd)
        kh = jnp.dot(k_in_b, wk_h, preferred_element_type=f32) + vrow(_BK, lo, hd)
        vh = jnp.dot(v_in_b, wv_h, preferred_element_type=f32) + vrow(_BV, lo, hd)

        # scores: contract dim 1 of both operands (no explicit kh.T through the XLU)
        s = jax.lax.dot_general(qh.astype(bf16), kh.astype(bf16),
                                dimension_numbers=(((1,), (1,)), ((), ())),
                                preferred_element_type=f32)       # (LN, SN)
        s = s + neg_mask
        s = s - jnp.max(s, axis=-1, keepdims=True)
        p = jnp.exp(s)                                            # f32 softmax math
        p = p * pl.reciprocal(jnp.sum(p, axis=-1, keepdims=True), approx=True)

        ctx_h = jnp.dot(p.astype(bf16), vh.astype(bf16), preferred_element_type=f32)
        attn = attn + jnp.dot(ctx_h.astype(bf16), wo_h, preferred_element_type=f32)
    attn = attn + vrow(_BO, 0, D)

    # residual + norm2 (f32)
    x = tgt + attn
    mu = jnp.mean(x, axis=-1, keepdims=True)
    var = jnp.mean((x - mu) ** 2, axis=-1, keepdims=True)
    x = (x - mu) * jax.lax.rsqrt(var + eps) * vrow(_G2, 0, D) + vrow(_BE2, 0, D)

    # FFN: linear1 -> relu -> linear2
    h1 = jnp.dot(x.astype(bf16), w_in_ref[:, OF1:OF1 + FF],
                 preferred_element_type=f32) + vrow(_B1, 0, FF)
    h1 = jnp.maximum(h1, 0.0)
    ff = jnp.dot(h1.astype(bf16), w2_ref[...], preferred_element_type=f32) + vrow(_B2, 0, D)

    # residual + norm3 (f32)
    y = x + ff
    mu = jnp.mean(y, axis=-1, keepdims=True)
    var = jnp.mean((y - mu) ** 2, axis=-1, keepdims=True)
    y = (y - mu) * jax.lax.rsqrt(var + eps) * vrow(_G3, 0, D) + vrow(_BE3, 0, D)

    out_ref[...] = y


# ----------------------------------------------------------------------------
# One-time parameter packing (prep cost, not a per-forward cost).
# ----------------------------------------------------------------------------
def prepare_params(params, *, nhead):
    D = params["wq_t"].shape[0]
    FF = params["w1_t"].shape[1]
    hd = D // nhead
    scale = 1.0 / math.sqrt(hd)

    # bf16 weight slabs: [wq*scale | wk | wv | wo | w1] and w2 separately.
    w_in = jnp.concatenate(
        [params["wq_t"] * scale, params["wk_t"], params["wv_t"],
         params["wo_t"], params["w1_t"]], axis=1).astype(jnp.bfloat16)   # (D, 4D+FF)
    w2 = params["w2_t"].astype(jnp.bfloat16)                             # (FF, D)

    width = max(D, FF)

    def row(v):
        v = jnp.asarray(v, jnp.float32).reshape(-1)
        return jnp.pad(v, (0, width - v.shape[0]))

    vecs = jnp.stack([
        row(params["bq"] * scale), row(params["bk"]), row(params["bv"]), row(params["bo"]),
        row(params["b1"]), row(params["b2"]),
        row(params["g2"]), row(params["be2"]), row(params["g3"]), row(params["be3"]),
    ], axis=0)                                                            # (10, width) f32
    return {"w_in": w_in, "w2": w2, "vecs": vecs}


# ----------------------------------------------------------------------------
# Wrapper: free contiguous reshapes only, grid=(1,)
# ----------------------------------------------------------------------------
@functools.partial(jax.jit, static_argnames=("nhead",))
def transformer_decoder_layer(tgt, memory, packed, *, nhead,
                              pos=None, query_pos=None,
                              memory_key_padding_mask=None):
    """tgt: (L, N, D), memory: (S, N, D) -- PyTorch seq-major layout. Returns (L, N, D)."""
    L, N, D = tgt.shape
    S = memory.shape[0]
    LN, SN = L * N, S * N

    # Free (contiguous) reshapes: (seq, N, D) -> (seq*N, D). No activation transposes.
    tensor_args = [tgt.reshape(LN, D), memory.reshape(SN, D)]
    has_qpos = query_pos is not None
    has_pos = pos is not None
    if has_qpos:
        tensor_args.append(query_pos.reshape(LN, D))
    if has_pos:
        tensor_args.append(pos.reshape(SN, D))

    # Tiny (1, S*N) additive key-padding row (0 keep / -1e30 drop), (s, n) key order.
    if memory_key_padding_mask is not None:
        pad = jnp.transpose(memory_key_padding_mask).reshape(1, SN)   # PyTorch (N,S) bool
        pad_add = jnp.where(pad, jnp.float32(-1e30), jnp.float32(0.0))
    else:
        pad_add = jnp.zeros((1, SN), jnp.float32)
    tensor_args.append(pad_add)

    weight_args = [packed["w_in"], packed["w2"], packed["vecs"]]

    def full_spec(shape):
        return pl.BlockSpec(shape, lambda i: (0,) * len(shape))

    kernel = functools.partial(_decoder_layer_kernel, nhead=nhead, batch=N,
                               has_qpos=has_qpos, has_pos=has_pos)

    out2 = pl.pallas_call(
        kernel,
        out_shape=jax.ShapeDtypeStruct((LN, D), jnp.float32),
        grid_spec=pltpu.PrefetchScalarGridSpec(
            num_scalar_prefetch=0,
            grid=(1,),                                   # whole problem in one step
            in_specs=[full_spec(a.shape) for a in tensor_args + weight_args],
            out_specs=full_spec((LN, D)),
        ),
        compiler_params=pltpu.CompilerParams(dimension_semantics=("arbitrary",)),
    )(*tensor_args, *weight_args)

    return out2.reshape(L, N, D)                         # free contiguous reshape back


# ----------------------------------------------------------------------------
# Pure-JAX f32 reference (mirrors PyTorch forward_post, eval mode)
# ----------------------------------------------------------------------------
def reference_decoder_layer(tgt, memory, params, *, nhead, pos=None, query_pos=None,
                            memory_key_padding_mask=None, eps=1e-5):
    L, N, D = tgt.shape
    S = memory.shape[0]
    hd = D // nhead

    def ln(x, g, b):
        mu = jnp.mean(x, -1, keepdims=True)
        var = jnp.mean((x - mu) ** 2, -1, keepdims=True)
        return (x - mu) / jnp.sqrt(var + eps) * g + b

    q_in = tgt if query_pos is None else tgt + query_pos
    k_in = memory if pos is None else memory + pos
    Q = q_in @ params["wq_t"] + params["bq"]
    K = k_in @ params["wk_t"] + params["bk"]
    V = memory @ params["wv_t"] + params["bv"]

    Qh = Q.reshape(L, N, nhead, hd).transpose(1, 2, 0, 3) / math.sqrt(hd)
    Kh = K.reshape(S, N, nhead, hd).transpose(1, 2, 0, 3)
    Vh = V.reshape(S, N, nhead, hd).transpose(1, 2, 0, 3)
    scores = jnp.einsum("nhld,nhsd->nhls", Qh, Kh)
    if memory_key_padding_mask is not None:
        scores = jnp.where(memory_key_padding_mask[:, None, None, :], -1e30, scores)
    attn = jax.nn.softmax(scores, axis=-1)
    ctx = jnp.einsum("nhls,nhsd->nhld", attn, Vh).transpose(2, 0, 1, 3).reshape(L, N, D)
    attn_out = ctx @ params["wo_t"] + params["bo"]

    x = ln(tgt + attn_out, params["g2"], params["be2"])
    ff = jnp.maximum(x @ params["w1_t"] + params["b1"], 0.0) @ params["w2_t"] + params["b2"]
    return ln(x + ff, params["g3"], params["be3"])


# ----------------------------------------------------------------------------
# Main
# ----------------------------------------------------------------------------
if __name__ == "__main__":
    L, S, N = 8, 16, 2            # tgt seq len, prior (memory) seq len, batch
    D, H, FF = 64, 2, 128         # Adapter decoder layer: d_model=64, nhead=2, ff=2*64

    key = jax.random.PRNGKey(0)
    ks = jax.random.split(key, 16)

    def rnd(k, shape, scale=0.1):
        return jax.random.normal(k, shape, dtype=jnp.float32) * scale

    # Synthetic parameters. Linear weights stored pre-transposed (in, out): y = x @ W_T + b.
    params = {
        "wq_t": rnd(ks[0], (D, D)), "bq": rnd(ks[1], (1, D)),
        "wk_t": rnd(ks[2], (D, D)), "bk": rnd(ks[3], (1, D)),
        "wv_t": rnd(ks[4], (D, D)), "bv": rnd(ks[5], (1, D)),
        "wo_t": rnd(ks[6], (D, D)), "bo": rnd(ks[7], (1, D)),
        "g2": jnp.ones((1, D), jnp.float32), "be2": jnp.zeros((1, D), jnp.float32),
        "w1_t": rnd(ks[8], (D, FF)), "b1": rnd(ks[9], (1, FF)),
        "w2_t": rnd(ks[10], (FF, D)), "b2": rnd(ks[11], (1, D)),
        "g3": jnp.ones((1, D), jnp.float32), "be3": jnp.zeros((1, D), jnp.float32),
    }
    packed = prepare_params(params, nhead=H)

    tgt = rnd(ks[12], (L, N, D), scale=1.0)
    memory = rnd(ks[13], (S, N, D), scale=1.0)

    # memory_key_padding_mask (N, S): True = padded prior key (the Adapter's prior_mask)
    kpm = jnp.zeros((N, S), dtype=bool).at[1, S - 3:].set(True)

    # Adapter call path: pos=None, query_pos=None, memory_key_padding_mask=prior_mask.
    out = transformer_decoder_layer(tgt, memory, packed, nhead=H,
                                    memory_key_padding_mask=kpm)
    out = jax.block_until_ready(out)

    ref = reference_decoder_layer(tgt, memory, params, nhead=H,
                                  memory_key_padding_mask=kpm)
    assert out.shape == (L, N, D)
    # Tolerance budget: kernel feeds the MXU bf16 operands (per perf review) while the
    # reference is pure f32; softmax/LayerNorm math stays f32 in the kernel.
    max_err = float(jnp.max(jnp.abs(out - ref)))
    assert jnp.allclose(out, ref, atol=4e-2, rtol=4e-2), \
        f"mismatch vs reference (max abs err {max_err})"

    print("KERNEL_OK")
</pallas_src>

<mosaic_0001>
module attributes {stable_mosaic.version = 11 : i64} {
  func.func @_decoder_layer_kernel(%arg0: i32, %arg1: memref<16x64xf32, #tpu.memory_space<vmem>>, %arg2: memref<32x64xf32, #tpu.memory_space<vmem>>, %arg3: memref<1x32xf32, #tpu.memory_space<vmem>>, %arg4: memref<64x384xbf16, #tpu.memory_space<vmem>>, %arg5: memref<128x64xbf16, #tpu.memory_space<vmem>>, %arg6: memref<10x128xf32, #tpu.memory_space<vmem>>, %arg7: memref<16x64xf32, #tpu.memory_space<vmem>>) attributes {dimension_semantics = [#tpu.dimension_semantics<arbitrary>], iteration_bounds = array<i64: 1>, scalar_prefetch = 0 : i64, scratch_operands = 0 : i64, tpu.core_type = #tpu.core_type<tc>, window_params = [{pipeline_mode = #tpu.pipeline_mode<synchronous>, transform_indices = @transform_0, window_bounds = array<i64: 16, 64>}, {pipeline_mode = #tpu.pipeline_mode<synchronous>, transform_indices = @transform_1, window_bounds = array<i64: 32, 64>}, {pipeline_mode = #tpu.pipeline_mode<synchronous>, transform_indices = @transform_2, window_bounds = array<i64: 1, 32>}, {pipeline_mode = #tpu.pipeline_mode<synchronous>, transform_indices = @transform_3, window_bounds = array<i64: 64, 384>}, {pipeline_mode = #tpu.pipeline_mode<synchronous>, transform_indices = @transform_4, window_bounds = array<i64: 128, 64>}, {pipeline_mode = #tpu.pipeline_mode<synchronous>, transform_indices = @transform_5, window_bounds = array<i64: 10, 128>}, {pipeline_mode = #tpu.pipeline_mode<synchronous>, transform_indices = @transform_6, window_bounds = array<i64: 16, 64>}]} {
    %c0 = arith.constant 0 : index
    %c0_0 = arith.constant 0 : index
    %0 = vector.load %arg1[%c0, %c0_0] : memref<16x64xf32, #tpu.memory_space<vmem>>, vector<16x64xf32>
    %c0_1 = arith.constant 0 : index
    %c0_2 = arith.constant 0 : index
    %1 = vector.load %arg2[%c0_1, %c0_2] : memref<32x64xf32, #tpu.memory_space<vmem>>, vector<32x64xf32>
    %2 = arith.truncf %0 : vector<16x64xf32> to vector<16x64xbf16>
    %3 = arith.truncf %1 : vector<32x64xf32> to vector<32x64xbf16>
    %4 = arith.truncf %1 : vector<32x64xf32> to vector<32x64xbf16>
    %5 = tpu.iota {dimensions = array<i32: 0>} : vector<16x32xi32>
    %c2_i32 = arith.constant 2 : i32
    %c0_i32 = arith.constant 0 : i32
    %6 = arith.cmpi eq, %c2_i32, %c0_i32 : i32
    %c1_i32 = arith.constant 1 : i32
    %7 = arith.select %6, %c1_i32, %c2_i32 : i32
    %8 = vector.broadcast %7 : i32 to vector<16x32xi32>
    %9 = arith.remsi %5, %8 : vector<16x32xi32>
    %c0_i32_3 = arith.constant 0 : i32
    %10 = vector.broadcast %c0_i32_3 : i32 to vector<16x32xi32>
    %11 = arith.cmpi ne, %9, %10 : vector<16x32xi32>
    %c0_i32_4 = arith.constant 0 : i32
    %12 = vector.broadcast %c0_i32_4 : i32 to vector<16x32xi32>
    %13 = arith.cmpi slt, %9, %12 : vector<16x32xi32>
    %c0_i32_5 = arith.constant 0 : i32
    %14 = arith.cmpi slt, %7, %c0_i32_5 : i32
    %15 = vector.broadcast %14 : i1 to vector<16x32xi1>
    %16 = vector.broadcast %15 : vector<16x32xi1> to vector<16x32xi1>
    %17 = arith.xori %13, %16 : vector<16x32xi1>
    %18 = arith.andi %17, %11 : vector<16x32xi1>
    %19 = vector.broadcast %7 : i32 to vector<16x32xi32>
    %20 = arith.addi %9, %19 : vector<16x32xi32>
    %21 = arith.select %18, %20, %9 : vector<16x32xi1>, vector<16x32xi32>
    %22 = tpu.iota {dimensions = array<i32: 1>} : vector<16x32xi32>
    %c2_i32_6 = arith.constant 2 : i32
    %c0_i32_7 = arith.constant 0 : i32
    %23 = arith.cmpi eq, %c2_i32_6, %c0_i32_7 : i32
    %c1_i32_8 = arith.constant 1 : i32
    %24 = arith.select %23, %c1_i32_8, %c2_i32_6 : i32
    %25 = vector.broadcast %24 : i32 to vector<16x32xi32>
    %26 = arith.remsi %22, %25 : vector<16x32xi32>
    %c0_i32_9 = arith.constant 0 : i32
    %27 = vector.broadcast %c0_i32_9 : i32 to vector<16x32xi32>
    %28 = arith.cmpi ne, %26, %27 : vector<16x32xi32>
    %c0_i32_10 = arith.constant 0 : i32
    %29 = vector.broadcast %c0_i32_10 : i32 to vector<16x32xi32>
    %30 = arith.cmpi slt, %26, %29 : vector<16x32xi32>
    %c0_i32_11 = arith.constant 0 : i32
    %31 = arith.cmpi slt, %24, %c0_i32_11 : i32
    %32 = vector.broadcast %31 : i1 to vector<16x32xi1>
    %33 = vector.broadcast %32 : vector<16x32xi1> to vector<16x32xi1>
    %34 = arith.xori %30, %33 : vector<16x32xi1>
    %35 = arith.andi %34, %28 : vector<16x32xi1>
    %36 = vector.broadcast %24 : i32 to vector<16x32xi32>
    %37 = arith.addi %26, %36 : vector<16x32xi32>
    %38 = arith.select %35, %37, %26 : vector<16x32xi1>, vector<16x32xi32>
    %39 = arith.cmpi eq, %21, %38 : vector<16x32xi32>
    %c0_12 = arith.constant 0 : index
    %c0_13 = arith.constant 0 : index
    %40 = vector.load %arg3[%c0_12, %c0_13] : memref<1x32xf32, #tpu.memory_space<vmem>>, vector<1x32xf32>
    %cst = arith.constant -1.000000e+30 : f32
    %41 = vector.shape_cast %40 : vector<1x32xf32> to vector<1x32xf32>
    %42 = vector.broadcast %41 : vector<1x32xf32> to vector<16x32xf32>
    %43 = vector.broadcast %cst : f32 to vector<16x32xf32>
    %44 = arith.select %39, %42, %43 : vector<16x32xi1>, vector<16x32xf32>
    %cst_14 = arith.constant 0.000000e+00 : f32
    %45 = vector.broadcast %cst_14 : f32 to vector<16x64xf32>
    %c0_15 = arith.constant 0 : index
    %c0_16 = arith.constant 0 : index
    %46 = vector.load %arg4[%c0_15, %c0_16] : memref<64x384xbf16, #tpu.memory_space<vmem>>, vector<64x32xbf16>
    %c0_17 = arith.constant 0 : index
    %c64 = arith.constant 64 : index
    %47 = vector.load %arg4[%c0_17, %c64] : memref<64x384xbf16, #tpu.memory_space<vmem>>, vector<64x32xbf16>
    %c0_18 = arith.constant 0 : index
    %c128 = arith.constant 128 : index
    %48 = vector.load %arg4[%c0_18, %c128] : memref<64x384xbf16, #tpu.memory_space<vmem>>, vector<64x32xbf16>
    %c0_19 = arith.constant 0 : index
    %c192 = arith.constant 192 : index
    %49 = vector.load %arg4[%c0_19, %c192] : memref<64x384xbf16, #tpu.memory_space<vmem>>, vector<32x64xbf16>
    %cst_20 = arith.constant dense<0.000000e+00> : vector<16x32xf32>
    %50 = tpu.matmul %2, %46, %cst_20 {dimension_numbers = #tpu.dot_dimension_numbers<[1], [0], [0], [1], [0, 0, 1, 1], [], []>} : vector<16x64xbf16>, vector<64x32xbf16>, vector<16x32xf32> -> vector<16x32xf32>
    %c0_21 = arith.constant 0 : index
    %c0_22 = arith.constant 0 : index
    %51 = vector.load %arg6[%c0_21, %c0_22] : memref<10x128xf32, #tpu.memory_space<vmem>>, vector<1x32xf32>
    %52 = vector.broadcast %51 : vector<1x32xf32> to vector<16x32xf32>
    %53 = arith.addf %50, %52 : vector<16x32xf32>
    %cst_23 = arith.constant dense<0.000000e+00> : vector<32x32xf32>
    %54 = tpu.matmul %3, %47, %cst_23 {dimension_numbers = #tpu.dot_dimension_numbers<[1], [0], [0], [1], [0, 0, 1, 1], [], []>} : vector<32x64xbf16>, vector<64x32xbf16>, vector<32x32xf32> -> vector<32x32xf32>
    %c1 = arith.constant 1 : index
    %c0_24 = arith.constant 0 : index
    %55 = vector.load %arg6[%c1, %c0_24] : memref<10x128xf32, #tpu.memory_space<vmem>>, vector<1x32xf32>
    %56 = vector.broadcast %55 : vector<1x32xf32> to vector<32x32xf32>
    %57 = arith.addf %54, %56 : vector<32x32xf32>
    %cst_25 = arith.constant dense<0.000000e+00> : vector<32x32xf32>
    %58 = tpu.matmul %4, %48, %cst_25 {dimension_numbers = #tpu.dot_dimension_numbers<[1], [0], [0], [1], [0, 0, 1, 1], [], []>} : vector<32x64xbf16>, vector<64x32xbf16>, vector<32x32xf32> -> vector<32x32xf32>
    %c2 = arith.constant 2 : index
    %c0_26 = arith.constant 0 : index
    %59 = vector.load %arg6[%c2, %c0_26] : memref<10x128xf32, #tpu.memory_space<vmem>>, vector<1x32xf32>
    %60 = vector.broadcast %59 : vector<1x32xf32> to vector<32x32xf32>
    %61 = arith.addf %58, %60 : vector<32x32xf32>
    %62 = arith.truncf %53 : vector<16x32xf32> to vector<16x32xbf16>
    %63 = arith.truncf %57 : vector<32x32xf32> to vector<32x32xbf16>
    %cst_27 = arith.constant dense<0.000000e+00> : vector<16x32xf32>
    %64 = tpu.matmul %62, %63, %cst_27 {dimension_numbers = #tpu.dot_dimension_numbers<[1], [1], [0], [0], [0, 0, 1, 0], [], []>} : vector<16x32xbf16>, vector<32x32xbf16>, vector<16x32xf32> -> vector<16x32xf32>
    %65 = arith.addf %64, %44 : vector<16x32xf32>
    %cst_28 = arith.constant dense<0xFF800000> : vector<16xf32>
    %66 = vector.multi_reduction <maximumf>, %65, %cst_28 [1] : vector<16x32xf32> to vector<16xf32>
    %67 = vector.shape_cast %66 : vector<16xf32> to vector<16x1xf32>
    %68 = vector.broadcast %67 : vector<16x1xf32> to vector<16x32xf32>
    %69 = arith.subf %65, %68 : vector<16x32xf32>
    %70 = math.exp %69 : vector<16x32xf32>
    %cst_29 = arith.constant dense<0.000000e+00> : vector<16xf32>
    %71 = vector.multi_reduction <add>, %70, %cst_29 [1] : vector<16x32xf32> to vector<16xf32>
    %72 = vector.shape_cast %71 : vector<16xf32> to vector<16x1xf32>
    %73 = tpu.reciprocal %72 {approx = true} : vector<16x1xf32> -> vector<16x1xf32>
    %74 = vector.broadcast %73 : vector<16x1xf32> to vector<16x32xf32>
    %75 = arith.mulf %70, %74 : vector<16x32xf32>
    %76 = arith.truncf %75 : vector<16x32xf32> to vector<16x32xbf16>
    %77 = arith.truncf %61 : vector<32x32xf32> to vector<32x32xbf16>
    %cst_30 = arith.constant dense<0.000000e+00> : vector<16x32xf32>
    %78 = tpu.matmul %76, %77, %cst_30 {dimension_numbers = #tpu.dot_dimension_numbers<[1], [0], [0], [1], [0, 0, 1, 1], [], []>} : vector<16x32xbf16>, vector<32x32xbf16>, vector<16x32xf32> -> vector<16x32xf32>
    %79 = arith.truncf %78 : vector<16x32xf32> to vector<16x32xbf16>
    %cst_31 = arith.constant dense<0.000000e+00> : vector<16x64xf32>
    %80 = tpu.matmul %79, %49, %cst_31 {dimension_numbers = #tpu.dot_dimension_numbers<[1], [0], [0], [1], [0, 0, 1, 1], [], []>} : vector<16x32xbf16>, vector<32x64xbf16>, vector<16x64xf32> -> vector<16x64xf32>
    %81 = arith.addf %45, %80 : vector<16x64xf32>
    %c0_32 = arith.constant 0 : index
    %c32 = arith.constant 32 : index
    %82 = vector.load %arg4[%c0_32, %c32] : memref<64x384xbf16, #tpu.memory_space<vmem>>, vector<64x32xbf16>
    %c0_33 = arith.constant 0 : index
    %c96 = arith.constant 96 : index
    %83 = vector.load %arg4[%c0_33, %c96] : memref<64x384xbf16, #tpu.memory_space<vmem>>, vector<64x32xbf16>
    %c0_34 = arith.constant 0 : index
    %c160 = arith.constant 160 : index
    %84 = vector.load %arg4[%c0_34, %c160] : memref<64x384xbf16, #tpu.memory_space<vmem>>, vector<64x32xbf16>
    %c32_35 = arith.constant 32 : index
    %c192_36 = arith.constant 192 : index
    %85 = vector.load %arg4[%c32_35, %c192_36] : memref<64x384xbf16, #tpu.memory_space<vmem>>, vector<32x64xbf16>
    %cst_37 = arith.constant dense<0.000000e+00> : vector<16x32xf32>
    %86 = tpu.matmul %2, %82, %cst_37 {dimension_numbers = #tpu.dot_dimension_numbers<[1], [0], [0], [1], [0, 0, 1, 1], [], []>} : vector<16x64xbf16>, vector<64x32xbf16>, vector<16x32xf32> -> vector<16x32xf32>
    %c0_38 = arith.constant 0 : index
    %c32_39 = arith.constant 32 : index
    %87 = vector.load %arg6[%c0_38, %c32_39] : memref<10x128xf32, #tpu.memory_space<vmem>>, vector<1x32xf32>
    %88 = vector.broadcast %87 : vector<1x32xf32> to vector<16x32xf32>
    %89 = arith.addf %86, %88 : vector<16x32xf32>
    %cst_40 = arith.constant dense<0.000000e+00> : vector<32x32xf32>
    %90 = tpu.matmul %3, %83, %cst_40 {dimension_numbers = #tpu.dot_dimension_numbers<[1], [0], [0], [1], [0, 0, 1, 1], [], []>} : vector<32x64xbf16>, vector<64x32xbf16>, vector<32x32xf32> -> vector<32x32xf32>
    %c1_41 = arith.constant 1 : index
    %c32_42 = arith.constant 32 : index
    %91 = vector.load %arg6[%c1_41, %c32_42] : memref<10x128xf32, #tpu.memory_space<vmem>>, vector<1x32xf32>
    %92 = vector.broadcast %91 : vector<1x32xf32> to vector<32x32xf32>
    %93 = arith.addf %90, %92 : vector<32x32xf32>
    %cst_43 = arith.constant dense<0.000000e+00> : vector<32x32xf32>
    %94 = tpu.matmul %4, %84, %cst_43 {dimension_numbers = #tpu.dot_dimension_numbers<[1], [0], [0], [1], [0, 0, 1, 1], [], []>} : vector<32x64xbf16>, vector<64x32xbf16>, vector<32x32xf32> -> vector<32x32xf32>
    %c2_44 = arith.constant 2 : index
    %c32_45 = arith.constant 32 : index
    %95 = vector.load %arg6[%c2_44, %c32_45] : memref<10x128xf32, #tpu.memory_space<vmem>>, vector<1x32xf32>
    %96 = vector.broadcast %95 : vector<1x32xf32> to vector<32x32xf32>
    %97 = arith.addf %94, %96 : vector<32x32xf32>
    %98 = arith.truncf %89 : vector<16x32xf32> to vector<16x32xbf16>
    %99 = arith.truncf %93 : vector<32x32xf32> to vector<32x32xbf16>
    %cst_46 = arith.constant dense<0.000000e+00> : vector<16x32xf32>
    %100 = tpu.matmul %98, %99, %cst_46 {dimension_numbers = #tpu.dot_dimension_numbers<[1], [1], [0], [0], [0, 0, 1, 0], [], []>} : vector<16x32xbf16>, vector<32x32xbf16>, vector<16x32xf32> -> vector<16x32xf32>
    %101 = arith.addf %100, %44 : vector<16x32xf32>
    %cst_47 = arith.constant dense<0xFF800000> : vector<16xf32>
    %102 = vector.multi_reduction <maximumf>, %101, %cst_47 [1] : vector<16x32xf32> to vector<16xf32>
    %103 = vector.shape_cast %102 : vector<16xf32> to vector<16x1xf32>
    %104 = vector.broadcast %103 : vector<16x1xf32> to vector<16x32xf32>
    %105 = arith.subf %101, %104 : vector<16x32xf32>
    %106 = math.exp %105 : vector<16x32xf32>
    %cst_48 = arith.constant dense<0.000000e+00> : vector<16xf32>
    %107 = vector.multi_reduction <add>, %106, %cst_48 [1] : vector<16x32xf32> to vector<16xf32>
    %108 = vector.shape_cast %107 : vector<16xf32> to vector<16x1xf32>
    %109 = tpu.reciprocal %108 {approx = true} : vector<16x1xf32> -> vector<16x1xf32>
    %110 = vector.broadcast %109 : vector<16x1xf32> to vector<16x32xf32>
    %111 = arith.mulf %106, %110 : vector<16x32xf32>
    %112 = arith.truncf %111 : vector<16x32xf32> to vector<16x32xbf16>
    %113 = arith.truncf %97 : vector<32x32xf32> to vector<32x32xbf16>
    %cst_49 = arith.constant dense<0.000000e+00> : vector<16x32xf32>
    %114 = tpu.matmul %112, %113, %cst_49 {dimension_numbers = #tpu.dot_dimension_numbers<[1], [0], [0], [1], [0, 0, 1, 1], [], []>} : vector<16x32xbf16>, vector<32x32xbf16>, vector<16x32xf32> -> vector<16x32xf32>
    %115 = arith.truncf %114 : vector<16x32xf32> to vector<16x32xbf16>
    %cst_50 = arith.constant dense<0.000000e+00> : vector<16x64xf32>
    %116 = tpu.matmul %115, %85, %cst_50 {dimension_numbers = #tpu.dot_dimension_numbers<[1], [0], [0], [1], [0, 0, 1, 1], [], []>} : vector<16x32xbf16>, vector<32x64xbf16>, vector<16x64xf32> -> vector<16x64xf32>
    %117 = arith.addf %81, %116 : vector<16x64xf32>
    %c3 = arith.constant 3 : index
    %c0_51 = arith.constant 0 : index
    %118 = vector.load %arg6[%c3, %c0_51] : memref<10x128xf32, #tpu.memory_space<vmem>>, vector<1x64xf32>
    %119 = vector.broadcast %118 : vector<1x64xf32> to vector<16x64xf32>
    %120 = arith.addf %117, %119 : vector<16x64xf32>
    %121 = arith.addf %0, %120 : vector<16x64xf32>
    %cst_52 = arith.constant dense<0.000000e+00> : vector<16xf32>
    %122 = vector.multi_reduction <add>, %121, %cst_52 [1] : vector<16x64xf32> to vector<16xf32>
    %123 = vector.shape_cast %122 : vector<16xf32> to vector<16x1xf32>
    %cst_53 = arith.constant 6.400000e+01 : f32
    %124 = vector.broadcast %cst_53 : f32 to vector<16x1xf32>
    %125 = arith.divf %123, %124 : vector<16x1xf32>
    %126 = vector.broadcast %125 : vector<16x1xf32> to vector<16x64xf32>
    %127 = arith.subf %121, %126 : vector<16x64xf32>
    %128 = arith.mulf %127, %127 : vector<16x64xf32>
    %cst_54 = arith.constant dense<0.000000e+00> : vector<16xf32>
    %129 = vector.multi_reduction <add>, %128, %cst_54 [1] : vector<16x64xf32> to vector<16xf32>
    %130 = vector.shape_cast %129 : vector<16xf32> to vector<16x1xf32>
    %cst_55 = arith.constant 6.400000e+01 : f32
    %131 = vector.broadcast %cst_55 : f32 to vector<16x1xf32>
    %132 = arith.divf %130, %131 : vector<16x1xf32>
    %133 = vector.broadcast %125 : vector<16x1xf32> to vector<16x64xf32>
    %134 = arith.subf %121, %133 : vector<16x64xf32>
    %cst_56 = arith.constant 9.99999974E-6 : f32
    %135 = vector.broadcast %cst_56 : f32 to vector<16x1xf32>
    %136 = arith.addf %132, %135 : vector<16x1xf32>
    %137 = math.rsqrt %136 : vector<16x1xf32>
    %138 = vector.broadcast %137 : vector<16x1xf32> to vector<16x64xf32>
    %139 = arith.mulf %134, %138 : vector<16x64xf32>
    %c6 = arith.constant 6 : index
    %c0_57 = arith.constant 0 : index
    %140 = vector.load %arg6[%c6, %c0_57] : memref<10x128xf32, #tpu.memory_space<vmem>>, vector<1x64xf32>
    %141 = vector.broadcast %140 : vector<1x64xf32> to vector<16x64xf32>
    %142 = arith.mulf %139, %141 : vector<16x64xf32>
    %c7 = arith.constant 7 : index
    %c0_58 = arith.constant 0 : index
    %143 = vector.load %arg6[%c7, %c0_58] : memref<10x128xf32, #tpu.memory_space<vmem>>, vector<1x64xf32>
    %144 = vector.broadcast %143 : vector<1x64xf32> to vector<16x64xf32>
    %145 = arith.addf %142, %144 : vector<16x64xf32>
    %146 = arith.truncf %145 : vector<16x64xf32> to vector<16x64xbf16>
    %c0_59 = arith.constant 0 : index
    %c256 = arith.constant 256 : index
    %147 = vector.load %arg4[%c0_59, %c256] : memref<64x384xbf16, #tpu.memory_space<vmem>>, vector<64x128xbf16>
    %cst_60 = arith.constant dense<0.000000e+00> : vector<16x128xf32>
    %148 = tpu.matmul %146, %147, %cst_60 {dimension_numbers = #tpu.dot_dimension_numbers<[1], [0], [0], [1], [0, 0, 1, 1], [], []>} : vector<16x64xbf16>, vector<64x128xbf16>, vector<16x128xf32> -> vector<16x128xf32>
    %c4 = arith.constant 4 : index
    %c0_61 = arith.constant 0 : index
    %149 = vector.load %arg6[%c4, %c0_61] : memref<10x128xf32, #tpu.memory_space<vmem>>, vector<1x128xf32>
    %150 = vector.broadcast %149 : vector<1x128xf32> to vector<16x128xf32>
    %151 = arith.addf %148, %150 : vector<16x128xf32>
    %cst_62 = arith.constant 0.000000e+00 : f32
    %152 = vector.broadcast %cst_62 : f32 to vector<16x128xf32>
    %153 = arith.maximumf %151, %152 : vector<16x128xf32>
    %154 = arith.truncf %153 : vector<16x128xf32> to vector<16x128xbf16>
    %c0_63 = arith.constant 0 : index
    %c0_64 = arith.constant 0 : index
    %155 = vector.load %arg5[%c0_63, %c0_64] : memref<128x64xbf16, #tpu.memory_space<vmem>>, vector<128x64xbf16>
    %cst_65 = arith.constant dense<0.000000e+00> : vector<16x64xf32>
    %156 = tpu.matmul %154, %155, %cst_65 {dimension_numbers = #tpu.dot_dimension_numbers<[1], [0], [0], [1], [0, 0, 1, 1], [], []>} : vector<16x128xbf16>, vector<128x64xbf16>, vector<16x64xf32> -> vector<16x64xf32>
    %c5 = arith.constant 5 : index
    %c0_66 = arith.constant 0 : index
    %157 = vector.load %arg6[%c5, %c0_66] : memref<10x128xf32, #tpu.memory_space<vmem>>, vector<1x64xf32>
    %158 = vector.broadcast %157 : vector<1x64xf32> to vector<16x64xf32>
    %159 = arith.addf %156, %158 : vector<16x64xf32>
    %160 = arith.addf %145, %159 : vector<16x64xf32>
    %cst_67 = arith.constant dense<0.000000e+00> : vector<16xf32>
    %161 = vector.multi_reduction <add>, %160, %cst_67 [1] : vector<16x64xf32> to vector<16xf32>
    %162 = vector.shape_cast %161 : vector<16xf32> to vector<16x1xf32>
    %cst_68 = arith.constant 6.400000e+01 : f32
    %163 = vector.broadcast %cst_68 : f32 to vector<16x1xf32>
    %164 = arith.divf %162, %163 : vector<16x1xf32>
    %165 = vector.broadcast %164 : vector<16x1xf32> to vector<16x64xf32>
    %166 = arith.subf %160, %165 : vector<16x64xf32>
    %167 = arith.mulf %166, %166 : vector<16x64xf32>
    %cst_69 = arith.constant dense<0.000000e+00> : vector<16xf32>
    %168 = vector.multi_reduction <add>, %167, %cst_69 [1] : vector<16x64xf32> to vector<16xf32>
    %169 = vector.shape_cast %168 : vector<16xf32> to vector<16x1xf32>
    %cst_70 = arith.constant 6.400000e+01 : f32
    %170 = vector.broadcast %cst_70 : f32 to vector<16x1xf32>
    %171 = arith.divf %169, %170 : vector<16x1xf32>
    %172 = vector.broadcast %164 : vector<16x1xf32> to vector<16x64xf32>
    %173 = arith.subf %160, %172 : vector<16x64xf32>
    %cst_71 = arith.constant 9.99999974E-6 : f32
    %174 = vector.broadcast %cst_71 : f32 to vector<16x1xf32>
    %175 = arith.addf %171, %174 : vector<16x1xf32>
    %176 = math.rsqrt %175 : vector<16x1xf32>
    %177 = vector.broadcast %176 : vector<16x1xf32> to vector<16x64xf32>
    %178 = arith.mulf %173, %177 : vector<16x64xf32>
    %c8 = arith.constant 8 : index
    %c0_72 = arith.constant 0 : index
    %179 = vector.load %arg6[%c8, %c0_72] : memref<10x128xf32, #tpu.memory_space<vmem>>, vector<1x64xf32>
    %180 = vector.broadcast %179 : vector<1x64xf32> to vector<16x64xf32>
    %181 = arith.mulf %178, %180 : vector<16x64xf32>
    %c9 = arith.constant 9 : index
    %c0_73 = arith.constant 0 : index
    %182 = vector.load %arg6[%c9, %c0_73] : memref<10x128xf32, #tpu.memory_space<vmem>>, vector<1x64xf32>
    %183 = vector.broadcast %182 : vector<1x64xf32> to vector<16x64xf32>
    %184 = arith.addf %181, %183 : vector<16x64xf32>
    %c0_74 = arith.constant 0 : index
    %c0_75 = arith.constant 0 : index
    %185 = vector.load %arg7[%c0_74, %c0_75] : memref<16x64xf32, #tpu.memory_space<vmem>>, vector<16x64xf32>
    tpu.vector_store %arg7[%c0_74, %c0_75], %184 {strides = array<i32>} : memref<16x64xf32, #tpu.memory_space<vmem>>, vector<16x64xf32>,
    return
  }
  func.func @transform_0(%arg0: i32) -> (i32, i32) {
    %c0_i32 = arith.constant 0 : i32
    %c0_i32_0 = arith.constant 0 : i32
    %c0_i32_1 = arith.constant 0 : i32
    return %c0_i32, %c0_i32_0 : i32, i32
  }
  func.func @transform_1(%arg0: i32) -> (i32, i32) {
    %c0_i32 = arith.constant 0 : i32
    %c0_i32_0 = arith.constant 0 : i32
    %c0_i32_1 = arith.constant 0 : i32
    return %c0_i32, %c0_i32_0 : i32, i32
  }
  func.func @transform_2(%arg0: i32) -> (i32, i32) {
    %c0_i32 = arith.constant 0 : i32
    %c0_i32_0 = arith.constant 0 : i32
    %c0_i32_1 = arith.constant 0 : i32
    return %c0_i32, %c0_i32_0 : i32, i32
  }
  func.func @transform_3(%arg0: i32) -> (i32, i32) {
    %c0_i32 = arith.constant 0 : i32
    %c0_i32_0 = arith.constant 0 : i32
    %c0_i32_1 = arith.constant 0 : i32
    return %c0_i32, %c0_i32_0 : i32, i32
  }
  func.func @transform_4(%arg0: i32) -> (i32, i32) {
    %c0_i32 = arith.constant 0 : i32
    %c0_i32_0 = arith.constant 0 : i32
    %c0_i32_1 = arith.constant 0 : i32
    return %c0_i32, %c0_i32_0 : i32, i32
  }
  func.func @transform_5(%arg0: i32) -> (i32, i32) {
    %c0_i32 = arith.constant 0 : i32
    %c0_i32_0 = arith.constant 0 : i32
    %c0_i32_1 = arith.constant 0 : i32
    return %c0_i32, %c0_i32_0 : i32, i32
  }
  func.func @transform_6(%arg0: i32) -> (i32, i32) {
    %c0_i32 = arith.constant 0 : i32
    %c0_i32_0 = arith.constant 0 : i32
    %c0_i32_1 = arith.constant 0 : i32
    return %c0_i32, %c0_i32_0 : i32, i32
  }
}

</mosaic_0001>

<bundles_post_ra>
// kernel: transformer_decoder_layer.1
= control target key start
LH: loop header
LB: loop body
LE: loop exit
PB: predicated region body
PF: predicated region fallthrough
CT: control target
= control target key end

     0   :  { %11 = vsyncpa [#allocation3], 0  ;;  %s1902_s0 = inlined_call_operand.vmem [shape: f32[16,64], index: 0, kind: input, shape index: {}]   ;;  %s1903_s1 = inlined_call_operand.vmem [shape: f32[32,64], index: 1, kind: input, shape index: {}]   ;;  %s1904_s2 = inlined_call_operand.vmem [shape: f32[1,32], index: 2, kind: input, shape index: {}]   ;;  %s1905_s3 = inlined_call_operand.vmem [shape: bf16[64,384], index: 3, kind: input, shape index: {}]   ;;  %s1906_s4 = inlined_call_operand.vmem [shape: bf16[128,64], index: 4, kind: input, shape index: {}]   ;;  %s1907_s5 = inlined_call_operand.hbm [shape: f32[10,128], index: 5, kind: input, shape index: {}]   ;;  %s1908_s6 = inlined_call_operand.hbm [shape: f32[16,64], index: 6, kind: output, shape index: {}]  }
   0x1   :  { %12 = vsyncpa [#allocation4], 0  ;;  %s1543_s21 = smov [#allocation2]  }
   0x2   :  { %s28_s22 = sshll.u32 %s1543_s21, 4  ;;  %s29_s22 = int_to_ptr.vmem [resolvable:$true] %s28_s22 }
   0x3   :  { %s1507_s23 = scalar_lea.vmem %s29_s22, 256  ;;  %p1512_p1 = scmp.lt.s32.totalorder %s29_s22, %s29_s22 }
   0x4   :  { %p1508_p0 = scmp.ne.s32.totalorder %s29_s22, %s1507_s23  ;;  %p1513_p2 = scmp.lt.s32.totalorder %s1507_s23, %s1507_s23 }
   0x6   :  { %p1514_p3 = por %p1513_p2, %p1512_p1 }
   0x8   :  { %p1515_p4 = pnand %p1514_p3, %p1508_p0 }
   0xa   :  { %1518 = shalt.err (!%p1515_p4)
}
   0xb   :  { %s1544_s24 = smov 128   ;;  %s1545_s25 = smov 8  }
   0xc   :  { %34 = dma.hbm_to_vmem [thread:$0]  %s1907_s5, 256, %s29_s22, [#allocation3], %s1544_s24, %s1544_s24, %s1545_s25  }
   0xd   :  { %1539 = dma.done.wait [#allocation3], 256  }
   0xe   :  { %1540 = vsyncadd [#allocation3], 4294967040  ;;  %v1546_v0 = vmov 0.0   ;;  %v1597_v1 = vld [vmem:[%s1905_s3 + $0x48] ss:$12 sps:$4 sm:$0xff]   ;;  %s1547_s8 = smov 64   ;;  %v48_v43 = vlaneseq }
   0xf   :  { %1294 = vmatprep.subr.bf16.mxu0 %v1546_v0  ;;  %v1602_v2 = vld [vmem:[%s1905_s3 + $0x30] ss:$12 sps:$4 sm:$0xff]   ;;  %201 = vrot.lane.b32.xlu0 %v1597_v1, %s1547_s8  ;;  %v1609_v3 = vld [vmem:[%s1905_s3 + $0x18] ss:$12 sps:$4 sm:$0xff]   ;;  %v1618_v4 = vld [vmem:[%s1905_s3] ss:$12 sps:$4 sm:$0xff]  }
  0x10   :  { %1295 = vmatpush3.bf16.msra.mxu0 %v1597_v1  ;;  %197 = vrot.lane.b32.xlu1 %v1609_v3, %s1547_s8  ;;  %v41_v5 = vld [vmem:[%s1903_s1] sm:$0xff]  ;;  %v42_v6 = vld [vmem:[%s1903_s1 + $0x8] sm:$0xff]  ;;  %vm145_vm0 = vcmask 523264   ;;  %vm1548_vm1 = vmmov 0   ;;  %v43_v15 = vld [vmem:[%s1903_s1 + $0x10] sm:$0xff]  ;;  %vm343_vm2 = vcmask 261120  }
  0x11   :  { %1296 = vmatprep.subr.bf16.mxu0 %v1546_v0  ;;  %v1626_v7 = vpack.c.bf16 %v42_v6, %v41_v5  ;;  %1302 = vmatprep.mubr.msk.bf16.mxu0 %vm1548_vm1, %v1546_v0  ;;  %v1641_v8 = vld [vmem:[%s1902_s0] sm:$0xff]  ;;  %v1646_v9 = vld [vmem:[%s1902_s0 + $0x8] sm:$0xff]  ;;  %v44_v16 = vld [vmem:[%s1903_s1 + $0x18] sm:$0xff]  ;;  %v49_v44 = vshrl.u32 %v48_v43, 7  ;;  %v76_v45 = vand.u32 127, %v48_v43  ;;  %s1550_s10 = smov 96  }
  0x12   :  { %v1652_v10 = vpack.c.bf16 %v1646_v9, %v1641_v8  ;;  %v1665_v17 = vpack.c.bf16 %v44_v16, %v43_v15  ;;  %v1672_v18 = vld [vmem:[#allocation2] ss:$0 sm:$0xff]  ;;  %v1676_v27 = vld [vmem:[#allocation2 + $0x1] ss:$0 sm:$0xff]  ;;  %v1692_v39 = vld [vmem:[%s1905_s3 + $0x4c] ss:$12 sps:$4 sm:$0xff]  }
  0x13   :  { %199 = vrot.lane.b32.xlu0 %v1602_v2, %s1547_s8  ;;  %1314 = vmatprep.mubr.msk.bf16.mxu1 %vm145_vm0, %v1626_v7  ;;  %v1697_v40 = vld [vmem:[%s1905_s3 + $0x34] ss:$12 sps:$4 sm:$0xff]   ;;  %v1705_v41 = vld [vmem:[%s1905_s3 + $0x1c] ss:$12 sps:$4 sm:$0xff]   ;;  %v1712_v42 = vld [vmem:[%s1905_s3 + $0x4] ss:$12 sps:$4 sm:$0xff]  }
  0x14   :  { %1297 = vmatpush3.bf16.msra.mxu0 %v1602_v2  ;;  %195 = vrot.lane.b32.xlu1 %v1618_v4, %s1547_s8  ;;  %v55_v46 = vand.u32 1, %v49_v44  ;;  %v81_v47 = vand.u32 1, %v76_v45  ;;  %v50_v48 = vadd.s32 8, %v49_v44  ;;  %v1180_v49 = vld [vmem:[%s1904_s2] ss:$0 sm:$0xff]  ;;  %s1549_s2 = smov 32  }
  0x15   :  { %1298 = vmatprep.subr.bf16.mxu0 %v1546_v0  ;;  %v1751_v16 = vld [vmem:[#allocation2 + $0x2] ss:$0 sm:$0xff] }
  0x16   :  { %vm89_vm3 = vcmp.eq.s32.totalorder %v55_v46, %v81_v47  ;;  %v62_v50 = vand.u32 1, %v50_v48 }
  0x17   :  { %v1725_v51 = vsel %vm89_vm3, %v1180_v49, -1e+30 }
  0x18   :  { %1299 = vmatpush3.bf16.msra.mxu0 %v1609_v3  ;;  %vm90_vm4 = vcmp.eq.s32.totalorder %v62_v50, %v81_v47 }
  0x19   :  { %1300 = vmatprep.subr.bf16.mxu0 %v1546_v0  ;;  %v1728_v55 = vsel %vm90_vm4, %v1180_v49, -1e+30 }
  0x1c   :  { %1301 = vmatpush3.bf16.msra.mxu0 %v1618_v4 }
  0x1d   :  { %1318 = vmatprep.subr.bf16.mxu0 %v1692_v39 }
  0x1f   :  { %1303 = vmatmul.mubr.msk.bf16.vlgmr.msra.gmra.mxu0 %vm145_vm0, %v1652_v10 }
  0x20   :  { %1326 = vmatprep.mubr.msk.bf16.mxu0 %vm145_vm0, %v1626_v7  ;;  %1319 = vmatpush3.bf16.msra.mxu0 %v1692_v39 }
  0x21   :  { %1320 = vmatprep.subr.bf16.mxu0 %v1697_v40 }
  0x24   :  { %1321 = vmatpush3.bf16.msra.mxu0 %v1697_v40 }
  0x25   :  { %1322 = vmatprep.subr.bf16.mxu0 %v1705_v41 }
  0x28   :  { %1323 = vmatpush3.bf16.msra.mxu0 %v1705_v41 }
  0x29   :  { %1324 = vmatprep.subr.bf16.mxu0 %v1712_v42 }
  0x2c   :  { %1325 = vmatpush3.bf16.msra.mxu0 %v1712_v42 }
  0x2d   :  { %1338 = vmatprep.subr.bf16.mxu0 %v1546_v0 }
  0x2f   :  { %1327 = vmatmul.mubr.msk.bf16.vlgmr.msra.gmra.mxu0 %vm145_vm0, %v1665_v17 }
  0x30   :  { %1342 = vmatprep.mubr.msk.bf16.mxu0 %vm1548_vm1, %v1546_v0 }
  0x81   :  { %v202_v11 = vpop.permute.xlu0 %201 }
  0x82   :  { %1306 = vmatprep.subr.bf16.mxu1 %v202_v11  ;;  %v198_v12 = vpop.permute.xlu1 %197 }
  0x83   :  { %1307 = vmatpush3.bf16.msra.mxu1 %v202_v11 }
  0x85   :  { %v200_v13 = vpop.permute.xlu0 %199 }
  0x86   :  { %1308 = vmatprep.subr.bf16.mxu1 %v200_v13  ;;  %v196_v14 = vpop.permute.xlu1 %195 }
  0x87   :  { %1309 = vmatpush3.bf16.msra.mxu1 %v200_v13 }
  0x88   :  { %1310 = vmatprep.subr.bf16.mxu1 %v198_v12 }
  0x8b   :  { %1311 = vmatpush3.bf16.msra.mxu1 %v198_v12 }
  0x8c   :  { %1312 = vmatprep.subr.bf16.mxu1 %v196_v14 }
  0x8f   :  { %1313 = vmatpush3.bf16.msra.mxu1 %v196_v14 }
  0x90   :  { %1330 = vmatprep.subr.bf16.mxu1 %v1546_v0 }
  0x92   :  { %1315 = vmatmul.mubr.msk.bf16.vlgmr.msra.gmra.mxu1 %vm145_vm0, %v1665_v17 }
  0x93   :  { %1334 = vmatprep.mubr.msk.bf16.mxu1 %vm1548_vm1, %v1546_v0 }
  0xdf   :  { %v183_v19 = vpop.f32.mrf.mxu0 }
  0xe0   :  { %v184_v21 = vadd.f32 %v1672_v18, %v183_v19 }
  0xe1   :  { %v1304_v20 = vpop.f32.mrf.mxu0 }
  0xe3   :  { %v186_v22 = vpop.f32.mrf.mxu0 }
  0xe4   :  { %v187_v23 = vadd.f32 %v1672_v18, %v186_v22 }
  0xe5   :  { %v1305_v24 = vpop.f32.mrf.mxu0 }
  0xe6   :  { %v340_v25 = vpack.c.bf16 %v187_v23, %v184_v21 }
  0xef   :  { %v1328_v15 = vpop.f32.mrf.mxu0 }
  0xf0   :  { %v334_v19 = vadd.f32 %v1328_v15, %v1751_v16 }
 0x152   :  { %v1316_v26 = vpop.f32.mrf.mxu1 }
 0x153   :  { %v256_v30 = vadd.f32 %v1316_v26, %v1676_v27 }
 0x154   :  { %v247_v28 = vpop.f32.mrf.mxu1 }
 0x155   :  { %v248_v36 = vadd.f32 %v1676_v27, %v247_v28 }
 0x156   :  { %v1317_v29 = vpop.f32.mrf.mxu1 }
 0x157   :  { %v259_v31 = vadd.f32 %v1317_v29, %v1676_v27 }
 0x158   :  { %v250_v32 = vpop.f32.mrf.mxu1 }
 0x159   :  { %v342_v33 = vpack.c.bf16 %v259_v31, %v256_v30  ;;  %v251_v34 = vadd.f32 %v1676_v27, %v250_v32 }
 0x15b   :  { %v351_v35 = vsel %vm343_vm2, %v342_v33, 0  ;;  %v341_v37 = vpack.c.bf16 %v251_v34, %v248_v36 }
 0x15c   :  { %1331 = vmatpush3.bf16.xpose.msra.mxu1 %v351_v35 }
 0x15d   :  { %1332 = vmatprep.subr.bf16.mxu1 %v1546_v0  ;;  %v348_v38 = vsel %vm343_vm2, %v341_v37, 0 }
 0x164   :  { %1333 = vmatpush3.bf16.xpose.msra.mxu1 %v348_v38 }
 0x165   :  { %1346 = vmatprep.subr.bf16.mxu1 %v1546_v0 }
 0x16b   :  { %1335 = vmatmul.mubr.msk.bf16.vlgmr.msra.gmra.mxu1 %vm343_vm2, %v340_v25 }
 0x16c   :  { %1354 = vmatprep.mubr.msk.bf16.mxu1 %vm1548_vm1, %v1546_v0 }
 0x22b   :  { %v387_v52 = vpop.f32.mrf.mxu1 }
 0x22c   :  { %v388_v53 = vadd.f32 %v387_v52, %v1725_v51 }
 0x22d   :  { %v1336_v54 = vpop.f32.mrf.mxu1 }
 0x22e   :  { %v394_v56 = vsel %vm343_vm2, %v388_v53, -inf }
 0x22f   :  { %395 = vmax.xlane.f32.xlu0 %v394_v56  ;;  %v390_v57 = vpop.f32.mrf.mxu1 }
 0x230   :  { %v391_v58 = vadd.f32 %v390_v57, %v1728_v55 }
 0x231   :  { %v1337_v59 = vpop.f32.mrf.mxu1 }
 0x232   :  { %v397_v60 = vsel %vm343_vm2, %v391_v58, -inf }
 0x233   :  { %398 = vmax.xlane.f32.xlu1 %v397_v60 }
 0x244   :  { %527 = vrot.lane.b32.xlu1 %v1597_v1, %s1549_s2 }
 0x248   :  { %523 = vrot.lane.b32.xlu1 %v1609_v3, %s1549_s2 }
 0x24c   :  { %521 = vrot.lane.b32.xlu1 %v1618_v4, %s1549_s2 }
 0x250   :  { %468 = vrot.lane.b32.xlu1 %v1602_v2, %s1550_s10 }
 0x254   :  { %464 = vrot.lane.b32.xlu1 %v1618_v4, %s1550_s10 }
 0x258   :  { %477 = vrot.lane.b32.xlu1 %v1672_v18, %s1550_s10  ;;  %v325_v18 = vpop.f32.mrf.mxu0 }
 0x259   :  { %v326_v22 = vadd.f32 %v1751_v16, %v325_v18 }
 0x25a   :  { %v1329_v20 = vpop.f32.mrf.mxu0 }
 0x25b   :  { %v337_v21 = vadd.f32 %v1329_v20, %v1751_v16 }
 0x25c   :  { %590 = vrot.lane.b32.xlu1 %v1697_v40, %s1550_s10  ;;  %v328_v24 = vpop.f32.mrf.mxu0 }
 0x25d   :  { %v418_v23 = vpack.c.bf16 %v337_v21, %v334_v19  ;;  %v329_v25 = vadd.f32 %v1751_v16, %v328_v24 }
 0x25f   :  { %1339 = vmatpush3.bf16.msra.mxu0 %v418_v23  ;;  %v417_v26 = vpack.c.bf16 %v329_v25, %v326_v22 }
 0x260   :  { %586 = vrot.lane.b32.xlu1 %v1712_v42, %s1550_s10  ;;  %1340 = vmatprep.subr.bf16.mxu0 %v1546_v0 }
 0x263   :  { %1341 = vmatpush3.bf16.msra.mxu0 %v417_v26 }
 0x2b8   :  { %v396_v61 = vpop.xlane.xlu0 %395 }
 0x2b9   :  { %v400_v62 = vsub.f32 %v388_v53, %v396_v61 }
 0x2bb   :  { %v402_v63 = vmul.f32 1.442695, %v400_v62 }
 0x2bc   :  { %v399_v5 = vpop.xlane.xlu1 %398 }
 0x2bd   :  { %1475 = vpow2.f32 %v402_v63  ;;  %v401_v6 = vsub.f32 %v391_v58, %v399_v5 }
 0x2bf   :  { %v404_v11 = vmul.f32 1.442695, %v401_v6 }
 0x2c0   :  { %v528_v28 = vpop.permute.xlu1 %527 }
 0x2c1   :  { %1477 = vpow2.f32 %v404_v11  ;;  %1358 = vmatprep.subr.bf16.mxu0 %v528_v28 }
 0x2c4   :  { %v524_v30 = vpop.permute.xlu1 %523 }
 0x2c8   :  { %v522_v32 = vpop.permute.xlu1 %521 }
 0x2ca   :  { %v1476_v12 = vpop.eup %1475 }
 0x2cb   :  { %v406_v4 = vsel %vm343_vm2, %v1476_v12, 0.0 }
 0x2cc   :  { %407 = vadd.xlane.f32.xlu0 %v406_v4 }
 0x2ce   :  { %v1478_v13 = vpop.eup %1477 }
 0x2cf   :  { %v409_v14 = vsel %vm343_vm2, %v1478_v13, 0.0 }
 0x2d0   :  { %410 = vadd.xlane.f32.xlu0 %v409_v14 }
 0x2e6   :  { %525 = vrot.lane.b32.xlu0 %v1602_v2, %s1549_s2 }
 0x2ea   :  { %470 = vrot.lane.b32.xlu0 %v1597_v1, %s1550_s10 }
 0x2ee   :  { %466 = vrot.lane.b32.xlu0 %v1609_v3, %s1550_s10  ;;  %v469_v3 = vpop.permute.xlu1 %468 }
 0x2f2   :  { %534 = vrot.lane.b32.xlu0 %v1676_v27, %s1550_s10  ;;  %v465_v38 = vpop.permute.xlu1 %464 }
 0x2f6   :  { %592 = vrot.lane.b32.xlu0 %v1692_v39, %s1550_s10  ;;  %v478_v5 = vpop.permute.xlu1 %477 }
 0x2fa   :  { %588 = vrot.lane.b32.xlu0 %v1705_v41, %s1550_s10  ;;  %v591_v14 = vpop.permute.xlu1 %590 }
 0x2fe   :  { %v587_v18 = vpop.permute.xlu1 %586 }
 0x355   :  { %v408_v29 = vpop.xlane.xlu0 %407 }
 0x356   :  { %1479 = vrcp.f32 %v408_v29 }
 0x359   :  { %v411_v31 = vpop.xlane.xlu0 %410 }
 0x35a   :  { %1481 = vrcp.f32 %v411_v31 }
 0x35d   :  { %v526_v2 = vpop.permute.xlu0 %525 }
 0x361   :  { %v471_v1 = vpop.permute.xlu0 %470 }
 0x362   :  { %1347 = vmatpush3.bf16.msra.mxu1 %v471_v1 }
 0x363   :  { %1348 = vmatprep.subr.bf16.mxu1 %v1546_v0  ;;  %v1480_v33 = vpop.eup %1479 }
 0x364   :  { %v414_v35 = vmul.f32 %v1480_v33, %v1476_v12 }
 0x365   :  { %v467_v34 = vpop.permute.xlu0 %466 }
 0x366   :  { %1349 = vmatpush3.bf16.msra.mxu1 %v469_v3 }
 0x367   :  { %v1482_v27 = vpop.eup %1481  ;;  %1350 = vmatprep.subr.bf16.mxu1 %v1546_v0 }
 0x368   :  { %v415_v36 = vmul.f32 %v1482_v27, %v1478_v13 }
 0x369   :  { %v535_v52 = vpop.permute.xlu0 %534 }
 0x36a   :  { %v416_v37 = vpack.c.bf16 %v415_v36, %v414_v35  ;;  %1351 = vmatpush3.bf16.msra.mxu1 %v467_v34 }
 0x36b   :  { %1352 = vmatprep.subr.bf16.mxu1 %v1546_v0 }
 0x36c   :  { %1343 = vmatmul.mubr.msk.bf16.vlgmr.msra.gmra.mxu0 %vm343_vm2, %v416_v37 }
 0x36d   :  { %1359 = vmatpush3.bf16.msra.mxu0 %v528_v28  ;;  %1366 = vmatprep.mubr.msk.bf16.mxu0 %vm145_vm0, %v1626_v7  ;;  %v593_v13 = vpop.permute.xlu0 %592 }
 0x36e   :  { %1360 = vmatprep.subr.bf16.mxu0 %v526_v2  ;;  %1353 = vmatpush3.bf16.msra.mxu1 %v465_v38 }
 0x36f   :  { %1370 = vmatprep.subr.bf16.mxu1 %v593_v13 }
 0x371   :  { %1361 = vmatpush3.bf16.msra.mxu0 %v526_v2  ;;  %1355 = vmatmul.mubr.msk.bf16.vlgmr.msra.gmra.mxu1 %vm145_vm0, %v1652_v10  ;;  %v589_v15 = vpop.permute.xlu0 %588 }
 0x372   :  { %1362 = vmatprep.subr.bf16.mxu0 %v524_v30  ;;  %1378 = vmatprep.mubr.msk.bf16.mxu1 %vm145_vm0, %v1626_v7 }
 0x373   :  { %1371 = vmatpush3.bf16.msra.mxu1 %v593_v13 }
 0x374   :  { %1372 = vmatprep.subr.bf16.mxu1 %v591_v14 }
 0x375   :  { %1363 = vmatpush3.bf16.msra.mxu0 %v524_v30 }
 0x376   :  { %1364 = vmatprep.subr.bf16.mxu0 %v522_v32 }
 0x377   :  { %1373 = vmatpush3.bf16.msra.mxu1 %v591_v14 }
 0x378   :  { %1374 = vmatprep.subr.bf16.mxu1 %v589_v15 }
 0x379   :  { %1365 = vmatpush3.bf16.msra.mxu0 %v522_v32 }
 0x37a   :  { %1382 = vmatprep.subr.bf16.mxu0 %v1546_v0 }
 0x37b   :  { %1375 = vmatpush3.bf16.msra.mxu1 %v589_v15 }
 0x37c   :  { %1367 = vmatmul.mubr.msk.bf16.vlgmr.msra.gmra.mxu0 %vm145_vm0, %v1665_v17  ;;  %1376 = vmatprep.subr.bf16.mxu1 %v587_v18 }
 0x37d   :  { %1386 = vmatprep.mubr.msk.bf16.mxu0 %vm1548_vm1, %v1546_v0 }
 0x37f   :  { %1377 = vmatpush3.bf16.msra.mxu1 %v587_v18 }
 0x380   :  { %1406 = vmatprep.subr.bf16.mxu1 %v1546_v0 }
 0x382   :  { %1379 = vmatmul.mubr.msk.bf16.vlgmr.msra.gmra.mxu1 %vm145_vm0, %v1665_v17 }
 0x383   :  { %1410 = vmatprep.mubr.msk.bf16.mxu1 %vm1548_vm1, %v1546_v0 }
 0x42c   :  { %v1785_v43 = vpop.f32.mrf.mxu0 }
 0x42e   :  { %v1344_v44 = vpop.f32.mrf.mxu0 }
 0x430   :  { %v1787_v45 = vpop.f32.mrf.mxu0 }
 0x431   :  { %v463_v10 = vpack.c.bf16 %v1787_v45, %v1785_v43  ;;  %v514_v7 = vpop.f32.mrf.mxu1 }
 0x432   :  { %v1345_v46 = vpop.f32.mrf.mxu0  ;;  %v515_v11 = vadd.f32 %v514_v7, %v478_v5 }
 0x433   :  { %v1356_v47 = vpop.f32.mrf.mxu1 }
 0x435   :  { %v517_v48 = vpop.f32.mrf.mxu1 }
 0x436   :  { %v518_v12 = vadd.f32 %v517_v48, %v478_v5 }
 0x437   :  { %v1357_v49 = vpop.f32.mrf.mxu1 }
 0x438   :  { %v651_v4 = vpack.c.bf16 %v518_v12, %v515_v11 }
 0x43c   :  { %v1368_v50 = vpop.f32.mrf.mxu0 }
 0x43d   :  { %v580_v56 = vadd.f32 %v1368_v50, %v535_v52 }
 0x43e   :  { %v571_v53 = vpop.f32.mrf.mxu0 }
 0x43f   :  { %v572_v62 = vadd.f32 %v571_v53, %v535_v52 }
 0x440   :  { %v1369_v54 = vpop.f32.mrf.mxu0 }
 0x441   :  { %v583_v57 = vadd.f32 %v1369_v54, %v535_v52 }
 0x442   :  { %v574_v58 = vpop.f32.mrf.mxu0 }
 0x443   :  { %v653_v59 = vpack.c.bf16 %v583_v57, %v580_v56  ;;  %v575_v60 = vadd.f32 %v574_v58, %v535_v52 }
 0x445   :  { %v661_v61 = vsel %vm343_vm2, %v653_v59, 0  ;;  %v652_v63 = vpack.c.bf16 %v575_v60, %v572_v62  ;;  %v1208_v62 = vld [vmem:[#allocation2 + $0x3] ss:$0 sm:$0xff] }
 0x446   :  { %1383 = vmatpush3.bf16.xpose.msra.mxu0 %v661_v61 }
 0x447   :  { %1384 = vmatprep.subr.bf16.mxu0 %v1546_v0  ;;  %v658_v6 = vsel %vm343_vm2, %v652_v63, 0 }
 0x44e   :  { %1385 = vmatpush3.bf16.xpose.msra.mxu0 %v658_v6 }
 0x44f   :  { %1390 = vmatprep.subr.bf16.mxu0 %v1546_v0 }
 0x455   :  { %1387 = vmatmul.mubr.msk.bf16.vlgmr.msra.gmra.mxu0 %vm343_vm2, %v651_v4 }
 0x456   :  { %1394 = vmatprep.mubr.msk.bf16.mxu0 %vm1548_vm1, %v1546_v0 }
 0x515   :  { %v697_v19 = vpop.f32.mrf.mxu0 }
 0x516   :  { %v698_v20 = vadd.f32 %v697_v19, %v1725_v51 }
 0x517   :  { %v1388_v21 = vpop.f32.mrf.mxu0 }
 0x518   :  { %v704_v22 = vsel %vm343_vm2, %v698_v20, -inf }
 0x519   :  { %705 = vmax.xlane.f32.xlu0 %v704_v22  ;;  %v700_v23 = vpop.f32.mrf.mxu0 }
 0x51a   :  { %v701_v24 = vadd.f32 %v700_v23, %v1728_v55 }
 0x51b   :  { %v1389_v25 = vpop.f32.mrf.mxu0 }
 0x51c   :  { %v707_v26 = vsel %vm343_vm2, %v701_v24, -inf }
 0x51d   :  { %708 = vmax.xlane.f32.xlu1 %v707_v26 }
 0x52e   :  { %599 = vrot.lane.b32.xlu1 %v1751_v16, %s1550_s10  ;;  %v1380_v16 = vpop.f32.mrf.mxu1 }
 0x532   :  { %826 = vrot.lane.b32.xlu1 %v1705_v41, %s1547_s8  ;;  %v636_v41 = vpop.f32.mrf.mxu1 }
 0x534   :  { %v1381_v3 = vpop.f32.mrf.mxu1 }
 0x536   :  { %774 = vrot.lane.b32.xlu1 %v1697_v40, %s1547_s8  ;;  %v639_v35 = vpop.f32.mrf.mxu1 }
 0x5a2   :  { %v706_v17 = vpop.xlane.xlu0 %705 }
 0x5a3   :  { %v710_v51 = vsub.f32 %v698_v20, %v706_v17 }
 0x5a5   :  { %v712_v28 = vmul.f32 1.442695, %v710_v51 }
 0x5a6   :  { %v709_v29 = vpop.xlane.xlu1 %708 }
 0x5a7   :  { %1483 = vpow2.f32 %v712_v28  ;;  %v711_v30 = vsub.f32 %v701_v24, %v709_v29  ;;  %v1464_v28 = vld [vmem:[%s1905_s3 + $0x38] ss:$12 sps:$4 sm:$0xff]   ;;  %v1465_v29 = vld [vmem:[%s1905_s3 + $0x20] ss:$12 sps:$4 sm:$0xff]  }
 0x5a9   :  { %v714_v55 = vmul.f32 1.442695, %v711_v30  ;;  %v1466_v30 = vld [vmem:[%s1905_s3 + $0x8] ss:$12 sps:$4 sm:$0xff]  }
 0x5aa   :  { %v600_v40 = vpop.permute.xlu1 %599 }
 0x5ab   :  { %1485 = vpow2.f32 %v714_v55  ;;  %v645_v33 = vadd.f32 %v1380_v16, %v600_v40  ;;  %v648_v27 = vadd.f32 %v1381_v3, %v600_v40  ;;  %v637_v34 = vadd.f32 %v636_v41, %v600_v40  ;;  %v1467_v55 = vld [vmem:[%s1906_s4 + $0x38] sm:$0xff]  }
 0x5ac   :  { %v640_v37 = vadd.f32 %v639_v35, %v600_v40  ;;  %v1471_v16 = vld [vmem:[%s1906_s4 + $0x18] sm:$0xff]  }
 0x5ad   :  { %v728_v36 = vpack.c.bf16 %v648_v27, %v645_v33 }
 0x5ae   :  { %v727_v38 = vpack.c.bf16 %v640_v37, %v637_v34  ;;  %v827_v44 = vpop.permute.xlu1 %826 }
 0x5af   :  { %1391 = vmatpush3.bf16.msra.mxu0 %v728_v36  ;;  %1407 = vmatpush3.bf16.msra.mxu1 %v827_v44  ;;  %v1209_v36 = vld [vmem:[#allocation2 + $0x6] ss:$0 sm:$0xff] }
 0x5b0   :  { %1392 = vmatprep.subr.bf16.mxu0 %v1546_v0  ;;  %1408 = vmatprep.subr.bf16.mxu1 %v1546_v0 }
 0x5b2   :  { %v775_v53 = vpop.permute.xlu1 %774 }
 0x5b3   :  { %1393 = vmatpush3.bf16.msra.mxu0 %v727_v38 }
 0x5b4   :  { %v1484_v31 = vpop.eup %1483  ;;  %1398 = vmatprep.subr.bf16.mxu0 %v1546_v0 }
 0x5b5   :  { %v716_v2 = vsel %vm343_vm2, %v1484_v31, 0.0 }
 0x5b6   :  { %717 = vadd.xlane.f32.xlu0 %v716_v2  ;;  %v1469_v2 = vld [vmem:[%s1906_s4 + $0x28] sm:$0xff]  }
 0x5b8   :  { %v1486_v32 = vpop.eup %1485 }
 0x5b9   :  { %v719_v1 = vsel %vm343_vm2, %v1486_v32, 0.0 }
 0x5ba   :  { %720 = vadd.xlane.f32.xlu0 %v719_v1 }
 0x5d0   :  { %776 = vrot.lane.b32.xlu0 %v1692_v39, %s1547_s8 }
 0x5d4   :  { %824 = vrot.lane.b32.xlu0 %v1712_v42, %s1547_s8 }
 0x63f   :  { %v718_v7 = vpop.xlane.xlu0 %717 }
 0x640   :  { %1487 = vrcp.f32 %v718_v7  ;;  %v1210_v7 = vld [vmem:[#allocation2 + $0x7] ss:$0 sm:$0xff] }
 0x643   :  { %v721_v46 = vpop.xlane.xlu0 %720 }
 0x644   :  { %1489 = vrcp.f32 %v721_v46 }
 0x647   :  { %v777_v47 = vpop.permute.xlu0 %776 }
 0x64b   :  { %v825_v48 = vpop.permute.xlu0 %824 }
 0x64c   :  { %1409 = vmatpush3.bf16.msra.mxu1 %v825_v48 }
 0x64d   :  { %1426 = vmatprep.subr.bf16.mxu1 %v1546_v0  ;;  %v1488_v49 = vpop.eup %1487 }
 0x64e   :  { %v724_v42 = vmul.f32 %v1488_v49, %v1484_v31  ;;  %v1468_v31 = vld [vmem:[%s1906_s4 + $0x30] sm:$0xff]  }
 0x64f   :  { %1411 = vmatmul.mubr.msk.bf16.vlgmr.msra.gmra.mxu1 %vm343_vm2, %v463_v10 }
 0x650   :  { %1442 = vmatprep.mubr.msk.bf16.mxu1 %vm1548_vm1, %v1546_v0  ;;  %1427 = vmatpush3.bf16.msra.mxu1 %v1467_v55 }
 0x651   :  { %v1490_v39 = vpop.eup %1489  ;;  %1428 = vmatprep.subr.bf16.mxu1 %v1546_v0 }
 0x652   :  { %v725_v50 = vmul.f32 %v1490_v39, %v1486_v32  ;;  %v1470_v32 = vld [vmem:[%s1906_s4 + $0x20] sm:$0xff]   ;;  %v1472_v39 = vld [vmem:[%s1906_s4 + $0x10] sm:$0xff]  }
 0x654   :  { %v726_v52 = vpack.c.bf16 %v725_v50, %v724_v42  ;;  %1429 = vmatpush3.bf16.msra.mxu1 %v1468_v31  ;;  %v1473_v42 = vld [vmem:[%s1906_s4 + $0x8] sm:$0xff]   ;;  %v1474_v50 = vld [vmem:[%s1906_s4] sm:$0xff]   ;;  %s1551_s4 = smov [#allocation5]  }
 0x655   :  { %1430 = vmatprep.subr.bf16.mxu1 %v1546_v0  ;;  %v1227_v31 = vld [vmem:[#allocation2 + $0x9] ss:$0 sm:$0xff]  ;;  %s1168_s9 = sshll.u32 %s1551_s4, 4  ;;  %s1169_s9 = int_to_ptr.vmem [resolvable:$true] %s1168_s9 }
 0x656   :  { %1395 = vmatmul.mubr.msk.bf16.vlgmr.msra.gmra.mxu0 %vm343_vm2, %v726_v52  ;;  %v1211_v52 = vld [vmem:[#allocation2 + $0x4] ss:$0 sm:$0xff]  ;;  %s1519_s2 = scalar_lea.vmem %s1169_s9, 256  ;;  %p1524_p6 = scmp.lt.s32.totalorder %s1169_s9, %s1169_s9 }
 0x657   :  { %1399 = vmatpush3.bf16.msra.mxu0 %v777_v47  ;;  %1402 = vmatprep.mubr.msk.bf16.mxu0 %vm1548_vm1, %v1546_v0  ;;  %p1520_p5 = scmp.ne.s32.totalorder %s1169_s9, %s1519_s2  ;;  %p1525_p7 = scmp.lt.s32.totalorder %s1519_s2, %s1519_s2 }
 0x658   :  { %1400 = vmatprep.subr.bf16.mxu0 %v1546_v0  ;;  %1431 = vmatpush3.bf16.msra.mxu1 %v1469_v2 }
 0x659   :  { %1432 = vmatprep.subr.bf16.mxu1 %v1546_v0  ;;  %p1526_p8 = por %p1525_p7, %p1524_p6 }
 0x65b   :  { %1401 = vmatpush3.bf16.msra.mxu0 %v775_v53  ;;  %p1527_p9 = pnand %p1526_p8, %p1520_p5 }
 0x65c   :  { %1414 = vmatprep.subr.bf16.mxu0 %v1546_v0  ;;  %1433 = vmatpush3.bf16.msra.mxu1 %v1470_v32 }
 0x65d   :  { %1434 = vmatprep.subr.bf16.mxu1 %v1546_v0 }
 0x660   :  { %1435 = vmatpush3.bf16.msra.mxu1 %v1471_v16 }
 0x661   :  { %1436 = vmatprep.subr.bf16.mxu1 %v1546_v0 }
 0x664   :  { %1437 = vmatpush3.bf16.msra.mxu1 %v1472_v39 }
 0x665   :  { %1438 = vmatprep.subr.bf16.mxu1 %v1546_v0 }
 0x668   :  { %1439 = vmatpush3.bf16.msra.mxu1 %v1473_v42 }
 0x669   :  { %1440 = vmatprep.subr.bf16.mxu1 %v1546_v0 }
 0x66c   :  { %1441 = vmatpush3.bf16.msra.mxu1 %v1474_v50 }
 0x70f   :  { %v867_v43 = vpop.f32.mrf.mxu1 }
 0x711   :  { %v1412_v45 = vpop.f32.mrf.mxu1 }
 0x713   :  { %v870_v10 = vpop.f32.mrf.mxu1 }
 0x715   :  { %v1413_v54 = vpop.f32.mrf.mxu1 }
 0x716   :  { %v766_v56 = vpop.f32.mrf.mxu0 }
 0x718   :  { %v1396_v57 = vpop.f32.mrf.mxu0 }
 0x71a   :  { %v769_v58 = vpop.f32.mrf.mxu0 }
 0x71b   :  { %v773_v59 = vpack.c.bf16 %v769_v58, %v766_v56 }
 0x71c   :  { %v1397_v60 = vpop.f32.mrf.mxu0 }
 0x71d   :  { %1403 = vmatmul.mubr.msk.bf16.vlgmr.msra.gmra.mxu0 %vm343_vm2, %v773_v59  ;;  %v1217_v60 = vld [vmem:[#allocation2 + $0x5] ss:$0 sm:$0xff] }
 0x71e   :  { %1422 = vmatprep.mubr.msk.bf16.mxu0 %vm1548_vm1, %v1546_v0 }
 0x7dd   :  { %v817_v61 = vpop.f32.mrf.mxu0 }
 0x7de   :  { %v868_v63 = vadd.f32 %v867_v43, %v817_v61 }
 0x7df   :  { %v1404_v5 = vpop.f32.mrf.mxu0 }
 0x7e0   :  { %v879_v6 = vadd.f32 %v1208_v62, %v868_v63 }
 0x7e1   :  { %v820_v11 = vpop.f32.mrf.mxu0 }
 0x7e2   :  { %v871_v12 = vadd.f32 %v870_v10, %v820_v11  ;;  %v881_v4 = vadd.f32 %v879_v6, %v1641_v8 }
 0x7e3   :  { %v1405_v13 = vpop.f32.mrf.mxu0 }
 0x7e4   :  { %v880_v14 = vadd.f32 %v1208_v62, %v871_v12  ;;  %v883_v15 = vsel %vm145_vm0, %v881_v4, 0.0 }
 0x7e5   :  { %884 = vadd.xlane.f32.xlu1 %v883_v15 }
 0x7e6   :  { %v882_v18 = vadd.f32 %v880_v14, %v1646_v9  ;;  %v1463_v9 = vld [vmem:[%s1905_s3 + $0x50] ss:$12 sps:$4 sm:$0xff]  }
 0x7e7   :  { %1415 = vmatpush3.bf16.msra.mxu0 %v1463_v9 }
 0x7e8   :  { %v886_v19 = vsel %vm145_vm0, %v882_v18, 0.0  ;;  %1416 = vmatprep.subr.bf16.mxu0 %v1546_v0 }
 0x7e9   :  { %887 = vadd.xlane.f32.xlu0 %v886_v19 }
 0x7eb   :  { %1417 = vmatpush3.bf16.msra.mxu0 %v1464_v28 }
 0x7ec   :  { %1418 = vmatprep.subr.bf16.mxu0 %v1546_v0 }
 0x7ef   :  { %1419 = vmatpush3.bf16.msra.mxu0 %v1465_v29 }
 0x7f0   :  { %1420 = vmatprep.subr.bf16.mxu0 %v1546_v0 }
 0x7f3   :  { %1421 = vmatpush3.bf16.msra.mxu0 %v1466_v30  ;;  %v1226_v30 = vld [vmem:[#allocation2 + $0x8] ss:$0 sm:$0xff] }
 0x86e   :  { %v885_v20 = vpop.xlane.xlu1 %884 }
 0x86f   :  { %v890_v21 = vmul.f32 0.015625, %v885_v20 }
 0x871   :  { %v892_v22 = vsub.f32 %v881_v4, %v890_v21 }
 0x872   :  { %v888_v23 = vpop.xlane.xlu0 %887 }
 0x873   :  { %v891_v24 = vmul.f32 0.015625, %v888_v23  ;;  %v894_v25 = vmul.f32 %v892_v22, %v892_v22 }
 0x875   :  { %v893_v26 = vsub.f32 %v882_v18, %v891_v24  ;;  %v896_v17 = vsel %vm145_vm0, %v894_v25, 0.0 }
 0x876   :  { %897 = vadd.xlane.f32.xlu0 %v896_v17 }
 0x877   :  { %v895_v8 = vmul.f32 %v893_v26, %v893_v26 }
 0x879   :  { %v899_v51 = vsel %vm145_vm0, %v895_v8, 0.0 }
 0x87a   :  { %900 = vadd.xlane.f32.xlu1 %v899_v51 }
 0x8ff   :  { %v898_v1 = vpop.xlane.xlu0 %897 }
 0x900   :  { %v902_v41 = vmul.f32 0.015625, %v898_v1 }
 0x902   :  { %v904_v3 = vadd.f32 1e-05, %v902_v41 }
 0x903   :  { %v901_v40 = vpop.xlane.xlu1 %900 }
 0x904   :  { %1491 = vrsqrt.f32 %v904_v3  ;;  %v903_v33 = vmul.f32 0.015625, %v901_v40 }
 0x906   :  { %v905_v27 = vadd.f32 1e-05, %v903_v33 }
 0x908   :  { %1493 = vrsqrt.f32 %v905_v27 }
 0x911   :  { %v1492_v34 = vpop.eup %1491 }
 0x912   :  { %v908_v35 = vmul.f32 %v1492_v34, %v892_v22 }
 0x914   :  { %v915_v44 = vmul.f32 %v1209_v36, %v908_v35 }
 0x915   :  { %v1494_v37 = vpop.eup %1493 }
 0x916   :  { %v909_v38 = vmul.f32 %v1494_v37, %v893_v26  ;;  %v922_v47 = vadd.f32 %v1210_v7, %v915_v44 }
 0x918   :  { %v916_v46 = vmul.f32 %v1209_v36, %v909_v38 }
 0x91a   :  { %v923_v48 = vadd.f32 %v1210_v7, %v916_v46 }
 0x91c   :  { %v924_v49 = vpack.c.bf16 %v923_v48, %v922_v47 }
 0x91e   :  { %1423 = vmatmul.mubr.msk.bf16.vlgmr.msra.gmra.mxu0 %vm145_vm0, %v924_v49 }
 0x9de   :  { %v999_v53 = vpop.f32.mrf.mxu0 }
 0x9df   :  { %v1000_v45 = vadd.f32 %v1211_v52, %v999_v53 }
 0x9e0   :  { %v1424_v43 = vpop.f32.mrf.mxu0 }
 0x9e1   :  { %v1006_v57 = vmax.f32 %v1000_v45, 0.0 }
 0x9e2   :  { %v1002_v10 = vpop.f32.mrf.mxu0 }
 0x9e3   :  { %v1003_v54 = vadd.f32 %v1211_v52, %v1002_v10 }
 0x9e4   :  { %v1425_v56 = vpop.f32.mrf.mxu0 }
 0x9e5   :  { %v1007_v58 = vmax.f32 %v1003_v54, 0.0 }
 0x9e7   :  { %v1008_v59 = vpack.c.bf16 %v1007_v58, %v1006_v57 }
 0x9e9   :  { %1443 = vmatmul.mubr.bf16.vlgmr.msra.gmra.mxu1 %v1008_v59 }
 0xaa9   :  { %v1112_v61 = vpop.f32.mrf.mxu1 }
 0xaaa   :  { %v1113_v62 = vadd.f32 %v1217_v60, %v1112_v61 }
 0xaab   :  { %v1444_v0 = vpop.f32.mrf.mxu1 }
 0xaac   :  { %v1119_v63 = vadd.f32 %v1113_v62, %v922_v47 }
 0xaad   :  { %v1115_v5 = vpop.f32.mrf.mxu1 }
 0xaae   :  { %v1116_v6 = vadd.f32 %v1217_v60, %v1115_v5  ;;  %v1121_v11 = vsel %vm145_vm0, %v1119_v63, 0.0 }
 0xaaf   :  { %1122 = vadd.xlane.f32.xlu0 %v1121_v11  ;;  %v1445_v12 = vpop.f32.mrf.mxu1 }
 0xab0   :  { %v1120_v4 = vadd.f32 %v1116_v6, %v923_v48 }
 0xab2   :  { %v1124_v13 = vsel %vm145_vm0, %v1120_v4, 0.0 }
 0xab3   :  { %1125 = vadd.xlane.f32.xlu1 %v1124_v13 }
 0xb38   :  { %v1123_v14 = vpop.xlane.xlu0 %1122 }
 0xb39   :  { %v1127_v15 = vmul.f32 0.015625, %v1123_v14 }
 0xb3b   :  { %v1129_v18 = vsub.f32 %v1119_v63, %v1127_v15 }
 0xb3c   :  { %v1126_v19 = vpop.xlane.xlu1 %1125 }
 0xb3d   :  { %v1128_v20 = vmul.f32 0.015625, %v1126_v19  ;;  %v1131_v21 = vmul.f32 %v1129_v18, %v1129_v18 }
 0xb3f   :  { %v1130_v22 = vsub.f32 %v1120_v4, %v1128_v20  ;;  %v1133_v23 = vsel %vm145_vm0, %v1131_v21, 0.0 }
 0xb40   :  { %1134 = vadd.xlane.f32.xlu0 %v1133_v23 }
 0xb41   :  { %v1132_v24 = vmul.f32 %v1130_v22, %v1130_v22 }
 0xb43   :  { %v1136_v25 = vsel %vm145_vm0, %v1132_v24, 0.0 }
 0xb44   :  { %1137 = vadd.xlane.f32.xlu1 %v1136_v25 }
 0xbc9   :  { %v1135_v26 = vpop.xlane.xlu0 %1134 }
 0xbca   :  { %v1139_v17 = vmul.f32 0.015625, %v1135_v26 }
 0xbcc   :  { %v1141_v8 = vadd.f32 1e-05, %v1139_v17 }
 0xbcd   :  { %v1138_v51 = vpop.xlane.xlu1 %1137 }
 0xbce   :  { %1495 = vrsqrt.f32 %v1141_v8  ;;  %v1140_v9 = vmul.f32 0.015625, %v1138_v51 }
 0xbd0   :  { %v1142_v28 = vadd.f32 1e-05, %v1140_v9 }
 0xbd2   :  { %1497 = vrsqrt.f32 %v1142_v28 }
 0xbdb   :  { %v1496_v29 = vpop.eup %1495 }
 0xbdc   :  { %v1145_v55 = vmul.f32 %v1496_v29, %v1129_v18 }
 0xbde   :  { %v1152_v2 = vmul.f32 %v1226_v30, %v1145_v55 }
 0xbdf   :  { %v1498_v32 = vpop.eup %1497 }
 0xbe0   :  { %v1146_v16 = vmul.f32 %v1498_v32, %v1130_v22  ;;  %v1159_v1 = vadd.f32 %v1227_v31, %v1152_v2 }
 0xbe2   :  { %v1153_v41 = vmul.f32 %v1226_v30, %v1146_v16  ;;  %1161 = vst.msk [vmem:[#allocation5] sm:$0xff] %vm145_vm0, %v1159_v1 }
 0xbe4   :  { %v1160_v3 = vadd.f32 %v1227_v31, %v1153_v41 }
 0xbe6   :  { %1162 = vst.msk [vmem:[#allocation5 + $0x8] sm:$0xff] %vm145_vm0, %v1160_v3 }
 0xbe7   :  { %1530 = shalt.err (!%p1527_p9)
}
 0xbe8   :  { %1174 = dma.vmem_to_hbm [thread:$0]  %s1169_s9, 256, %s1908_s6, [#allocation4], %s1544_s24, %s1544_s24, %s1545_s25  }
 0xbe9   :  { %1541 = dma.done.wait [#allocation4], 256  }
 0xbea   :  { %1542 = vsyncadd [#allocation4], 4294967040 }
 0xbeb   :  { %1178 = vsyncpa [#allocation3], 1 }
 0xbec   :  { %1179 = vsyncpa [#allocation4], 1 }

</bundles_post_ra>
